<compile_context>
chip_gen: v6e
topology: v6e:2x2x1
jax: 0.10.0
libtpu: 0.0.40
codegen_flags: <defaults>
</compile_context>

<pallas_src>
import functools

import jax
import jax.numpy as jnp
from jax.experimental import pallas as pl
from jax.experimental.pallas import tpu as pltpu


_HIDDEN = 64
# Only force a multi-step grid (for v7x megacore sharding) once each tile would
# still hold a healthy number of rows; below this one step has least overhead.
_MIN_ROWS_PER_TILE = 512


def _qnet_kernel(x_ref, w1_ref, b1_ref, w2_ref, b2_ref, wh_ref, bh_ref, out_ref):
    # shared layer 1: (TB, S) @ (S, 64) + b1, ReLU   (fp32 operands, fp32 acc)
    h1 = jnp.dot(x_ref[...], w1_ref[...], preferred_element_type=jnp.float32)
    h1 = jnp.maximum(h1 + b1_ref[...], 0.0)
    # shared layer 2: (TB, 64) @ (64, 64) + b2, ReLU
    h2 = jnp.dot(h1, w2_ref[...], preferred_element_type=jnp.float32)
    h2 = jnp.maximum(h2 + b2_ref[...], 0.0)
    # fused heads: (TB, 64) @ (64, A*R) + bh
    q = jnp.dot(h2, wh_ref[...], preferred_element_type=jnp.float32)
    out_ref[...] = (q + bh_ref[...]).astype(out_ref.dtype)


def _choose_tiling(batch, block_b):
    """Returns (tile_rows, num_tiles) with tile_rows % 8 == 0 and padding <= 7*num_tiles."""
    ntiles = max(1, pl.cdiv(batch, block_b))
    # v7x megacore: keep >= 2 grid steps (even count) when the batch is large
    # enough that splitting does not shrink tiles into overhead territory.
    if ntiles == 1 and batch >= 2 * _MIN_ROWS_PER_TILE:
        ntiles = 2
    if ntiles > 1 and ntiles % 2 == 1:
        ntiles += 1
    tb = max(8, ((pl.cdiv(batch, ntiles) + 7) // 8) * 8)  # sublane-aligned
    return tb, ntiles


@functools.partial(jax.jit,
                   static_argnames=("num_actions", "reward_dim", "block_b"))
def multi_dim_qnetwork_forward(x, params, *, num_actions, reward_dim,
                               block_b=8192):
    """x: (B, state_dim) float32. Returns (B, num_actions, reward_dim) float32."""
    if block_b < 8 or block_b % 8 != 0:
        raise ValueError(f"block_b must be a positive multiple of 8, got {block_b}")

    w1, b1, w2, b2, wh, bh = params
    B, state_dim = x.shape
    hidden = w1.shape[1]
    out_cols = num_actions * reward_dim

    tb, ntiles = _choose_tiling(B, block_b)
    Bp = tb * ntiles
    if Bp != B:  # pads at most 7 rows per tile
        x = jnp.pad(x, ((0, Bp - B), (0, 0)))

    flops = 2 * Bp * (state_dim * hidden + hidden * hidden + hidden * out_cols)
    bytes_accessed = 4 * (Bp * (state_dim + out_cols)
                          + state_dim * hidden + hidden
                          + hidden * hidden + hidden
                          + hidden * out_cols + out_cols)

    out = pl.pallas_call(
        _qnet_kernel,
        out_shape=jax.ShapeDtypeStruct((Bp, out_cols), jnp.float32),
        grid=(ntiles,),
        in_specs=[
            # batch-tiled activation input
            pl.BlockSpec((tb, state_dim), lambda i: (i, 0)),
            # weights / biases: constant block index -> stay VMEM-resident
            pl.BlockSpec((state_dim, hidden), lambda i: (0, 0)),
            pl.BlockSpec((1, hidden), lambda i: (0, 0)),
            pl.BlockSpec((hidden, hidden), lambda i: (0, 0)),
            pl.BlockSpec((1, hidden), lambda i: (0, 0)),
            pl.BlockSpec((hidden, out_cols), lambda i: (0, 0)),
            pl.BlockSpec((1, out_cols), lambda i: (0, 0)),
        ],
        out_specs=pl.BlockSpec((tb, out_cols), lambda i: (i, 0)),
        compiler_params=pltpu.CompilerParams(
            dimension_semantics=("parallel",)),
        cost_estimate=pl.CostEstimate(
            flops=flops, transcendentals=0, bytes_accessed=bytes_accessed),
    )(x, w1, b1, w2, b2, wh, bh)

    if Bp != B:
        out = out[:B]
    # column index was a*R + r, so a plain reshape == torch.stack(dim=-1)
    return out.reshape(B, num_actions, reward_dim)


def init_params(key, state_dim, num_actions, reward_dim):
    """Deterministic synthetic parameters (PyTorch-like uniform fan-in init)."""
    ks = jax.random.split(key, 6)

    def lin(kw, kb, fan_in, fan_out):
        bound = 1.0 / jnp.sqrt(fan_in)
        w = jax.random.uniform(kw, (fan_in, fan_out), jnp.float32, -bound, bound)
        b = jax.random.uniform(kb, (1, fan_out), jnp.float32, -bound, bound)
        return w, b

    w1, b1 = lin(ks[0], ks[1], state_dim, _HIDDEN)
    w2, b2 = lin(ks[2], ks[3], _HIDDEN, _HIDDEN)

    # heads: reward_dim independent Linear(64, num_actions), fused so that
    # fused column (a * reward_dim + r) == head r, action a.
    bound = 1.0 / jnp.sqrt(float(_HIDDEN))
    wh_per = jax.random.uniform(ks[4], (reward_dim, _HIDDEN, num_actions),
                                jnp.float32, -bound, bound)
    bh_per = jax.random.uniform(ks[5], (reward_dim, num_actions),
                                jnp.float32, -bound, bound)
    wh = jnp.transpose(wh_per, (1, 2, 0)).reshape(_HIDDEN, num_actions * reward_dim)
    bh = jnp.transpose(bh_per, (1, 0)).reshape(1, num_actions * reward_dim)
    return (w1, b1, w2, b2, wh, bh)


def reference_forward(x, params, num_actions, reward_dim):
    """Pure-fp32 JAX reference matching the PyTorch module semantics."""
    w1, b1, w2, b2, wh, bh = params
    h = jnp.maximum(x @ w1 + b1, 0.0)
    h = jnp.maximum(h @ w2 + b2, 0.0)
    q = h @ wh + bh
    return q.reshape(-1, num_actions, reward_dim)


if __name__ == "__main__":
    state_dim, num_actions, reward_dim = 16, 6, 3
    batch = 4

    key = jax.random.PRNGKey(0)
    kx, kp = jax.random.split(key)
    x = jax.random.normal(kx, (batch, state_dim), jnp.float32)
    params = init_params(kp, state_dim, num_actions, reward_dim)

    out = multi_dim_qnetwork_forward(
        x, params, num_actions=num_actions, reward_dim=reward_dim)
    out = jax.block_until_ready(out)

    assert out.shape == (batch, num_actions, reward_dim), out.shape

    ref = reference_forward(x, params, num_actions, reward_dim)
    assert jnp.allclose(out, ref, atol=1e-3, rtol=1e-3), \
        "mismatch vs fp32 reference"

    # Also exercise a batch that is not a multiple of the tile / of 8, to cover
    # the padding-aware tiling path (still tiny; fast on any generation).
    x2 = jax.random.normal(kx, (37, state_dim), jnp.float32)
    out2 = jax.block_until_ready(multi_dim_qnetwork_forward(
        x2, params, num_actions=num_actions, reward_dim=reward_dim))
    ref2 = reference_forward(x2, params, num_actions, reward_dim)
    assert out2.shape == (37, num_actions, reward_dim), out2.shape
    assert jnp.allclose(out2, ref2, atol=1e-3, rtol=1e-3), \
        "mismatch vs fp32 reference (padded batch)"

    print("KERNEL_OK")
</pallas_src>

<mosaic_0001>
module attributes {stable_mosaic.version = 11 : i64} {
  func.func @_qnet_kernel(%arg0: i32, %arg1: memref<8x16xf32, #tpu.memory_space<vmem>>, %arg2: memref<16x64xf32, #tpu.memory_space<vmem>>, %arg3: memref<1x64xf32, #tpu.memory_space<vmem>>, %arg4: memref<64x64xf32, #tpu.memory_space<vmem>>, %arg5: memref<1x64xf32, #tpu.memory_space<vmem>>, %arg6: memref<64x18xf32, #tpu.memory_space<vmem>>, %arg7: memref<1x18xf32, #tpu.memory_space<vmem>>, %arg8: memref<8x18xf32, #tpu.memory_space<vmem>>) attributes {dimension_semantics = [#tpu.dimension_semantics<parallel>], iteration_bounds = array<i64: 1>, scalar_prefetch = 0 : i64, scratch_operands = 0 : i64, tpu.core_type = #tpu.core_type<tc>, window_params = [{transform_indices = @transform_0, window_bounds = array<i64: 8, 16>}, {pipeline_mode = #tpu.pipeline_mode<synchronous>, transform_indices = @transform_1, window_bounds = array<i64: 16, 64>}, {pipeline_mode = #tpu.pipeline_mode<synchronous>, transform_indices = @transform_2, window_bounds = array<i64: 1, 64>}, {pipeline_mode = #tpu.pipeline_mode<synchronous>, transform_indices = @transform_3, window_bounds = array<i64: 64, 64>}, {pipeline_mode = #tpu.pipeline_mode<synchronous>, transform_indices = @transform_4, window_bounds = array<i64: 1, 64>}, {pipeline_mode = #tpu.pipeline_mode<synchronous>, transform_indices = @transform_5, window_bounds = array<i64: 64, 18>}, {pipeline_mode = #tpu.pipeline_mode<synchronous>, transform_indices = @transform_6, window_bounds = array<i64: 1, 18>}, {transform_indices = @transform_7, window_bounds = array<i64: 8, 18>}]} {
    %c0 = arith.constant 0 : index
    %c0_0 = arith.constant 0 : index
    %0 = vector.load %arg1[%c0, %c0_0] : memref<8x16xf32, #tpu.memory_space<vmem>>, vector<8x16xf32>
    %c0_1 = arith.constant 0 : index
    %c0_2 = arith.constant 0 : index
    %1 = vector.load %arg2[%c0_1, %c0_2] : memref<16x64xf32, #tpu.memory_space<vmem>>, vector<16x64xf32>
    %cst = arith.constant dense<0.000000e+00> : vector<8x64xf32>
    %2 = tpu.matmul %0, %1, %cst {dimension_numbers = #tpu.dot_dimension_numbers<[1], [0], [0], [1], [0, 0, 1, 1], [], []>} : vector<8x16xf32>, vector<16x64xf32>, vector<8x64xf32> -> vector<8x64xf32>
    %c0_3 = arith.constant 0 : index
    %c0_4 = arith.constant 0 : index
    %3 = vector.load %arg3[%c0_3, %c0_4] : memref<1x64xf32, #tpu.memory_space<vmem>>, vector<1x64xf32>
    %4 = vector.broadcast %3 : vector<1x64xf32> to vector<8x64xf32>
    %5 = arith.addf %2, %4 : vector<8x64xf32>
    %cst_5 = arith.constant 0.000000e+00 : f32
    %6 = vector.broadcast %cst_5 : f32 to vector<8x64xf32>
    %7 = arith.maximumf %5, %6 : vector<8x64xf32>
    %c0_6 = arith.constant 0 : index
    %c0_7 = arith.constant 0 : index
    %8 = vector.load %arg4[%c0_6, %c0_7] : memref<64x64xf32, #tpu.memory_space<vmem>>, vector<64x64xf32>
    %cst_8 = arith.constant dense<0.000000e+00> : vector<8x64xf32>
    %9 = tpu.matmul %7, %8, %cst_8 {dimension_numbers = #tpu.dot_dimension_numbers<[1], [0], [0], [1], [0, 0, 1, 1], [], []>} : vector<8x64xf32>, vector<64x64xf32>, vector<8x64xf32> -> vector<8x64xf32>
    %c0_9 = arith.constant 0 : index
    %c0_10 = arith.constant 0 : index
    %10 = vector.load %arg5[%c0_9, %c0_10] : memref<1x64xf32, #tpu.memory_space<vmem>>, vector<1x64xf32>
    %11 = vector.broadcast %10 : vector<1x64xf32> to vector<8x64xf32>
    %12 = arith.addf %9, %11 : vector<8x64xf32>
    %cst_11 = arith.constant 0.000000e+00 : f32
    %13 = vector.broadcast %cst_11 : f32 to vector<8x64xf32>
    %14 = arith.maximumf %12, %13 : vector<8x64xf32>
    %c0_12 = arith.constant 0 : index
    %c0_13 = arith.constant 0 : index
    %15 = vector.load %arg6[%c0_12, %c0_13] : memref<64x18xf32, #tpu.memory_space<vmem>>, vector<64x18xf32>
    %cst_14 = arith.constant dense<0.000000e+00> : vector<8x18xf32>
    %16 = tpu.matmul %14, %15, %cst_14 {dimension_numbers = #tpu.dot_dimension_numbers<[1], [0], [0], [1], [0, 0, 1, 1], [], []>} : vector<8x64xf32>, vector<64x18xf32>, vector<8x18xf32> -> vector<8x18xf32>
    %c0_15 = arith.constant 0 : index
    %c0_16 = arith.constant 0 : index
    %17 = vector.load %arg7[%c0_15, %c0_16] : memref<1x18xf32, #tpu.memory_space<vmem>>, vector<1x18xf32>
    %18 = vector.broadcast %17 : vector<1x18xf32> to vector<8x18xf32>
    %19 = arith.addf %16, %18 : vector<8x18xf32>
    %c0_17 = arith.constant 0 : index
    %c0_18 = arith.constant 0 : index
    %20 = vector.load %arg8[%c0_17, %c0_18] : memref<8x18xf32, #tpu.memory_space<vmem>>, vector<8x18xf32>
    tpu.vector_store %arg8[%c0_17, %c0_18], %19 {strides = array<i32>} : memref<8x18xf32, #tpu.memory_space<vmem>>, vector<8x18xf32>,
    return
  }
  func.func @transform_0(%arg0: i32) -> (i32, i32) {
    %c0_i32 = arith.constant 0 : i32
    %c0_i32_0 = arith.constant 0 : i32
    return %arg0, %c0_i32 : i32, i32
  }
  func.func @transform_1(%arg0: i32) -> (i32, i32) {
    %c0_i32 = arith.constant 0 : i32
    %c0_i32_0 = arith.constant 0 : i32
    %c0_i32_1 = arith.constant 0 : i32
    return %c0_i32, %c0_i32_0 : i32, i32
  }
  func.func @transform_2(%arg0: i32) -> (i32, i32) {
    %c0_i32 = arith.constant 0 : i32
    %c0_i32_0 = arith.constant 0 : i32
    %c0_i32_1 = arith.constant 0 : i32
    return %c0_i32, %c0_i32_0 : i32, i32
  }
  func.func @transform_3(%arg0: i32) -> (i32, i32) {
    %c0_i32 = arith.constant 0 : i32
    %c0_i32_0 = arith.constant 0 : i32
    %c0_i32_1 = arith.constant 0 : i32
    return %c0_i32, %c0_i32_0 : i32, i32
  }
  func.func @transform_4(%arg0: i32) -> (i32, i32) {
    %c0_i32 = arith.constant 0 : i32
    %c0_i32_0 = arith.constant 0 : i32
    %c0_i32_1 = arith.constant 0 : i32
    return %c0_i32, %c0_i32_0 : i32, i32
  }
  func.func @transform_5(%arg0: i32) -> (i32, i32) {
    %c0_i32 = arith.constant 0 : i32
    %c0_i32_0 = arith.constant 0 : i32
    %c0_i32_1 = arith.constant 0 : i32
    return %c0_i32, %c0_i32_0 : i32, i32
  }
  func.func @transform_6(%arg0: i32) -> (i32, i32) {
    %c0_i32 = arith.constant 0 : i32
    %c0_i32_0 = arith.constant 0 : i32
    %c0_i32_1 = arith.constant 0 : i32
    return %c0_i32, %c0_i32_0 : i32, i32
  }
  func.func @transform_7(%arg0: i32) -> (i32, i32) {
    %c0_i32 = arith.constant 0 : i32
    %c0_i32_0 = arith.constant 0 : i32
    return %arg0, %c0_i32 : i32, i32
  }
}

</mosaic_0001>

<bundles_post_ra>
// kernel: multi_dim_qnetwork_forward.1
= control target key start
LH: loop header
LB: loop body
LE: loop exit
PB: predicated region body
PF: predicated region fallthrough
CT: control target
= control target key end

     0   :  { %v369_v0 = vmov 0.0   ;;  %vm370_vm0 = vmmov 0   ;;  %vm36_vm1 = vcmask 130048   ;;  %vm126_vm2 = vcmask 523264   ;;  %s506_s1 = inlined_call_operand.vmem [shape: f32[16,64], index: 1, kind: input, shape index: {}]   ;;  %s507_s0 = inlined_call_operand.vmem [shape: f32[8,16], index: 0, kind: input, shape index: {}]   ;;  %s508_s3 = inlined_call_operand.vmem [shape: f32[64,64], index: 3, kind: input, shape index: {}]   ;;  %s509_s5 = inlined_call_operand.vmem [shape: f32[64,18], index: 5, kind: input, shape index: {}]   ;;  %s510_s2 = inlined_call_operand.vmem [shape: f32[1,64], index: 2, kind: input, shape index: {}]   ;;  %s511_s4 = inlined_call_operand.vmem [shape: f32[1,64], index: 4, kind: input, shape index: {}]   ;;  %s512_s6 = inlined_call_operand.vmem [shape: f32[1,18], index: 6, kind: input, shape index: {}]   ;;  %s513_s7 = inlined_call_operand.vmem [shape: f32[8,18], index: 7, kind: output, shape index: {}]  }
   0x1   :  { %322 = vmatprep.subr.mxu0 %v369_v0  ;;  %v28_v1 = vld [vmem:[%s506_s1 + $0x8] sm:$0xff]  ;;  %v27_v2 = vld [vmem:[%s506_s1] sm:$0xff]  ;;  %326 = vmatprep.mubr.msk.f32.mxu0 %vm370_vm0, %v369_v0  ;;  %v118_v4 = vld [vmem:[%s508_s3 + $0x38] sm:$0xff]  ;;  %vm289_vm3 = vcmask 146432  }
   0x2   :  { %323 = vmatpush3.msra.mxu0 %v28_v1  ;;  %v26_v3 = vld [vmem:[%s507_s0] sm:$0xff]  ;;  %329 = vmatprep.subr.mxu1 %v369_v0  ;;  %v117_v5 = vld [vmem:[%s508_s3 + $0x30] sm:$0xff]  ;;  %v116_v6 = vld [vmem:[%s508_s3 + $0x28] sm:$0xff] }
   0x3   :  { %324 = vmatprep.subr.mxu0 %v369_v0  ;;  %330 = vmatpush3.msra.mxu1 %v118_v4  ;;  %v115_v7 = vld [vmem:[%s508_s3 + $0x20] sm:$0xff]  ;;  %v114_v8 = vld [vmem:[%s508_s3 + $0x18] sm:$0xff]  ;;  %v113_v9 = vld [vmem:[%s508_s3 + $0x10] sm:$0xff] }
   0x4   :  { %325 = vmatpush3.msra.mxu0 %v27_v2  ;;  %331 = vmatprep.subr.mxu1 %v369_v0  ;;  %v112_v10 = vld [vmem:[%s508_s3 + $0x8] sm:$0xff]  ;;  %v111_v11 = vld [vmem:[%s508_s3] sm:$0xff]  ;;  %v208_v12 = vld [vmem:[%s509_s5 + $0x38] sm:$0xff] }
   0x5   :  { %327 = vmatmul.mubr.msk.f32.vlgmr.msra.gmra.mxu0 %vm36_vm1, %v26_v3  ;;  %332 = vmatpush3.msra.mxu1 %v117_v5  ;;  %v207_v13 = vld [vmem:[%s509_s5 + $0x30] sm:$0xff]  ;;  %v206_v14 = vld [vmem:[%s509_s5 + $0x28] sm:$0xff]  ;;  %v205_v15 = vld [vmem:[%s509_s5 + $0x20] sm:$0xff] }
   0x6   :  { %333 = vmatprep.subr.mxu1 %v369_v0  ;;  %345 = vmatprep.mubr.msk.f32.mxu1 %vm370_vm0, %v369_v0  ;;  %v204_v16 = vld [vmem:[%s509_s5 + $0x18] sm:$0xff]  ;;  %v295_v17 = vld [vmem:[%s510_s2] ss:$0 sm:$0xff]  ;;  %v203_v22 = vld [vmem:[%s509_s5 + $0x10] sm:$0xff] }
   0x7   :  { %334 = vmatpush3.msra.mxu1 %v116_v6  ;;  %348 = vmatprep.subr.mxu0 %v369_v0  ;;  %v202_v23 = vld [vmem:[%s509_s5 + $0x8] sm:$0xff]  ;;  %v201_v24 = vld [vmem:[%s509_s5] sm:$0xff] }
   0x8   :  { %335 = vmatprep.subr.mxu1 %v369_v0  ;;  %364 = vmatprep.mubr.msk.f32.mxu0 %vm370_vm0, %v369_v0  ;;  %v297_v25 = vld [vmem:[%s511_s4] ss:$0 sm:$0xff] }
   0x9   :  { %336 = vmatpush3.msra.mxu1 %v115_v7  ;;  %349 = vmatpush3.msra.mxu0 %v208_v12  ;;  %v299_v30 = vld [vmem:[%s512_s6] ss:$0 sm:$0xff] }
   0xa   :  { %337 = vmatprep.subr.mxu1 %v369_v0  ;;  %350 = vmatprep.subr.mxu0 %v369_v0 }
   0xb   :  { %338 = vmatpush3.msra.mxu1 %v114_v8  ;;  %351 = vmatpush3.msra.mxu0 %v207_v13 }
   0xc   :  { %339 = vmatprep.subr.mxu1 %v369_v0  ;;  %352 = vmatprep.subr.mxu0 %v369_v0 }
   0xd   :  { %340 = vmatpush3.msra.mxu1 %v113_v9  ;;  %353 = vmatpush3.msra.mxu0 %v206_v14 }
   0xe   :  { %341 = vmatprep.subr.mxu1 %v369_v0  ;;  %354 = vmatprep.subr.mxu0 %v369_v0 }
   0xf   :  { %342 = vmatpush3.msra.mxu1 %v112_v10  ;;  %355 = vmatpush3.msra.mxu0 %v205_v15 }
  0x10   :  { %343 = vmatprep.subr.mxu1 %v369_v0  ;;  %356 = vmatprep.subr.mxu0 %v369_v0 }
  0x11   :  { %344 = vmatpush3.msra.mxu1 %v111_v11  ;;  %357 = vmatpush3.msra.mxu0 %v204_v16 }
  0x12   :  { %358 = vmatprep.subr.mxu0 %v369_v0 }
  0x13   :  { %359 = vmatpush3.msra.mxu0 %v203_v22 }
  0x14   :  { %360 = vmatprep.subr.mxu0 %v369_v0 }
  0x15   :  { %361 = vmatpush3.msra.mxu0 %v202_v23 }
  0x16   :  { %362 = vmatprep.subr.mxu0 %v369_v0 }
  0x17   :  { %363 = vmatpush3.msra.mxu0 %v201_v24 }
  0xc5   :  { %v106_v18 = vpop.f32.mrf.mxu0 }
  0xc6   :  { %v107_v19 = vadd.f32 %v295_v17, %v106_v18 }
  0xc7   :  { %v328_v20 = vpop.f32.mrf.mxu0 }
  0xc8   :  { %v110_v21 = vmax.f32 %v107_v19, 0.0 }
  0xca   :  { %346 = vmatmul.mubr.msk.f32.vlgmr.msra.gmra.mxu1 %vm126_vm2, %v110_v21 }
 0x18a   :  { %v196_v26 = vpop.f32.mrf.mxu1 }
 0x18b   :  { %v197_v27 = vadd.f32 %v297_v25, %v196_v26 }
 0x18c   :  { %v347_v28 = vpop.f32.mrf.mxu1 }
 0x18d   :  { %v200_v29 = vmax.f32 %v197_v27, 0.0 }
 0x18f   :  { %365 = vmatmul.mubr.msk.f32.vlgmr.msra.gmra.mxu0 %vm126_vm2, %v200_v29 }
 0x24f   :  { %v285_v31 = vpop.f32.mrf.mxu0 }
 0x250   :  { %v286_v32 = vadd.f32 %v299_v30, %v285_v31 }
 0x251   :  { %v366_v33 = vpop.f32.mrf.mxu0 }
 0x252   :  { %290 = vst.msk [vmem:[%s513_s7] sm:$0xff] %vm289_vm3, %v286_v32 }

</bundles_post_ra>
